<compile_context>
chip_gen: v7x
topology: tpu7x:2x2x1
jax: 0.10.0
libtpu: 0.0.40
codegen_flags: <defaults>
</compile_context>

<pallas_src>
import jax
import jax.numpy as jnp
from jax.experimental import pallas as pl
from jax.experimental.pallas import tpu as pltpu


# ----------------------------- configuration -------------------------------
NUM_GENE = 64
NUM_MIRNA = 0
RAISED_DIM = 8
CONCATE_LAYER = 64
NUM_CLASSES = 4
BATCH = 2

NUM_NODE = NUM_GENE + NUM_MIRNA
P_IN = RAISED_DIM * NUM_NODE          # parallel_input = 512
P_H1 = P_IN // 2                      # 256
P_H2 = P_IN // 4                      # 128

# f32 parameter operand layout: rows 0..63 = expansion matrix E (64, 512),
# rows 64..71 = bias rows (each bias left-aligned in its own 512-lane row).
F_ROWS = NUM_NODE + 8                 # 72 (multiple of 8)
ROW_BREP = NUM_NODE + 0               # tiled pre_conv bias (512 valid lanes)
ROW_B1 = NUM_NODE + 1                 # (256 valid lanes)
ROW_B2 = NUM_NODE + 2                 # (128 valid lanes)
ROW_B3 = NUM_NODE + 3                 # (64 valid lanes)
ROW_BC = NUM_NODE + 4                 # (4 valid lanes)

# bf16 weight slab layout (rows stacked, padded to a common 256-lane width).
ROW_W1 = 0                            # (512, 256)
ROW_W2 = ROW_W1 + P_IN                # 512: (256, 256), valid cols 0:128
ROW_W3 = ROW_W2 + P_H1                # 768: (128, 256), valid cols 0:64
ROW_WC = ROW_W3 + P_H2                # 896: (64, 256),  valid cols 0:4
W_ROWS = ROW_WC + CONCATE_LAYER       # 960 (multiple of 8)
W_LANES = P_H1                        # 256 (multiple of 128)

TILE_B = 256                          # batch tile for the gridded path


# ------------------------------- kernel ------------------------------------
def baseline_kernel(x_ref, f_ref, w_ref, out_ref):
    x = x_ref[...]                                            # (TB, 64) f32

    E = f_ref[pl.ds(0, NUM_NODE), :]                          # (64, 512) f32
    brow = f_ref[pl.ds(NUM_NODE, 8), :]                       # (8, 512)  f32
    b_rep = brow[0:1, :]                                      # (1, 512)
    b1 = brow[1:2, :P_H1]                                     # (1, 256)
    b2 = brow[2:3, :P_H2]                                     # (1, 128)
    b3 = brow[3:4, :CONCATE_LAYER]                            # (1, 64)
    bc = brow[4:5, :NUM_CLASSES]                              # (1, 4)

    # pre_conv_linear_gene (1 -> raised_dim) + ReLU, as one f32 expansion
    # matmul on the MXU (kept f32 for exactness of the first layer).
    h = jnp.dot(x, E, preferred_element_type=jnp.float32) + b_rep
    h = jnp.maximum(h, 0.0)                                   # (TB, 512)

    # parallel_linear1 + ReLU (bf16 weights, f32 accumulation).
    w1 = w_ref[pl.ds(ROW_W1, P_IN), :]                        # (512, 256)
    h = jnp.dot(h.astype(jnp.bfloat16), w1,
                preferred_element_type=jnp.float32) + b1
    h = jnp.maximum(h, 0.0)                                   # (TB, 256)

    # parallel_linear2 + ReLU (padded weight; keep the valid 128 columns).
    w2 = w_ref[pl.ds(ROW_W2, P_H1), :]                        # (256, 256)
    h = jnp.dot(h.astype(jnp.bfloat16), w2,
                preferred_element_type=jnp.float32)[:, :P_H2] + b2
    h = jnp.maximum(h, 0.0)                                   # (TB, 128)

    # parallel_linear3 + ReLU (padded weight; keep the valid 64 columns).
    w3 = w_ref[pl.ds(ROW_W3, P_H2), :]                        # (128, 256)
    h = jnp.dot(h.astype(jnp.bfloat16), w3,
                preferred_element_type=jnp.float32)[:, :CONCATE_LAYER] + b3
    h = jnp.maximum(h, 0.0)                                   # (TB, 64)

    # dropout: eval mode (training=False) -> identity.

    # classifier (padded weight; keep the valid 4 columns).
    wc = w_ref[pl.ds(ROW_WC, CONCATE_LAYER), :]               # (64, 256)
    logits = jnp.dot(h.astype(jnp.bfloat16), wc,
                     preferred_element_type=jnp.float32)[:, :NUM_CLASSES] + bc

    # log_softmax over classes (dim=1), numerically stable form.
    m = jnp.max(logits, axis=-1, keepdims=True)
    z = logits - m
    lse = jnp.log(jnp.sum(jnp.exp(z), axis=-1, keepdims=True))
    out_ref[...] = z - lse


# ----------------------------- wrapper --------------------------------------
@jax.jit
def baseline_forward(x, kp):
    """x: (B, num_node, 1) float32.  kp: packed kernel params.  -> (B, C)."""
    B = x.shape[0]
    # drop the trailing feature dim of size 1 (contiguous reshape, no copy)
    x2d = x.reshape(B, NUM_NODE)
    fparams, wslab = kp["fparams"], kp["wslab"]

    if B <= TILE_B:
        # Small batch: gridless, everything whole-array resident in VMEM.
        vmem = pl.BlockSpec(memory_space=pltpu.MemorySpace.VMEM)
        return pl.pallas_call(
            baseline_kernel,
            out_shape=jax.ShapeDtypeStruct((B, NUM_CLASSES), jnp.float32),
            in_specs=[vmem, vmem, vmem],
            out_specs=vmem,
        )(x2d, fparams, wslab)

    # Large batch: grid over batch tiles.  Parameter operands use a constant
    # block index (DMA'd once, VMEM-resident across steps); "parallel"
    # semantics lets v7x shard tiles across its two TensorCores.
    pad = (-B) % TILE_B
    if pad:
        x2d = jnp.pad(x2d, ((0, pad), (0, 0)))
    bp = B + pad
    out = pl.pallas_call(
        baseline_kernel,
        out_shape=jax.ShapeDtypeStruct((bp, NUM_CLASSES), jnp.float32),
        grid_spec=pltpu.PrefetchScalarGridSpec(
            num_scalar_prefetch=0,
            grid=(bp // TILE_B,),
            in_specs=[
                pl.BlockSpec((TILE_B, NUM_NODE), lambda i: (i, 0)),
                pl.BlockSpec((F_ROWS, P_IN), lambda i: (0, 0)),
                pl.BlockSpec((W_ROWS, W_LANES), lambda i: (0, 0)),
            ],
            out_specs=pl.BlockSpec((TILE_B, NUM_CLASSES), lambda i: (i, 0)),
        ),
        compiler_params=pltpu.CompilerParams(
            dimension_semantics=("parallel",)),
    )(x2d, fparams, wslab)
    return out[:B]


# --------------------------- parameter handling ------------------------------
def init_params(key):
    ks = jax.random.split(key, 10)
    s = 0.05
    # matmul weights stored as (in_features, out_features) == PyTorch weight.T
    return {
        "wg": s * jax.random.normal(ks[0], (RAISED_DIM,), jnp.float32),
        "bg": s * jax.random.normal(ks[1], (RAISED_DIM,), jnp.float32),
        "w1": s * jax.random.normal(ks[2], (P_IN, P_H1), jnp.float32),
        "b1": s * jax.random.normal(ks[3], (P_H1,), jnp.float32),
        "w2": s * jax.random.normal(ks[4], (P_H1, P_H2), jnp.float32),
        "b2": s * jax.random.normal(ks[5], (P_H2,), jnp.float32),
        "w3": s * jax.random.normal(ks[6], (P_H2, CONCATE_LAYER), jnp.float32),
        "b3": s * jax.random.normal(ks[7], (CONCATE_LAYER,), jnp.float32),
        "wc": s * jax.random.normal(ks[8], (CONCATE_LAYER, NUM_CLASSES), jnp.float32),
        "bc": s * jax.random.normal(ks[9], (NUM_CLASSES,), jnp.float32),
    }


def make_kernel_params(p):
    """One-time packing of parameters into the two kernel operands."""
    # Expansion matrix E[n, n*8 + r] = wg[r]  (so x2d @ E == repeat(x)*tile(wg)).
    E = (jnp.eye(NUM_NODE, dtype=jnp.float32)[:, :, None]
         * p["wg"][None, None, :]).reshape(NUM_NODE, P_IN)
    b_rep = jnp.tile(p["bg"], (NUM_NODE,))                    # (512,)

    f = jnp.zeros((F_ROWS, P_IN), jnp.float32)
    f = f.at[:NUM_NODE, :].set(E)
    f = f.at[ROW_BREP, :].set(b_rep)
    f = f.at[ROW_B1, :P_H1].set(p["b1"])
    f = f.at[ROW_B2, :P_H2].set(p["b2"])
    f = f.at[ROW_B3, :CONCATE_LAYER].set(p["b3"])
    f = f.at[ROW_BC, :NUM_CLASSES].set(p["bc"])

    w = jnp.zeros((W_ROWS, W_LANES), jnp.float32)
    w = w.at[ROW_W1:ROW_W1 + P_IN, :].set(p["w1"])
    w = w.at[ROW_W2:ROW_W2 + P_H1, :P_H2].set(p["w2"])
    w = w.at[ROW_W3:ROW_W3 + P_H2, :CONCATE_LAYER].set(p["w3"])
    w = w.at[ROW_WC:ROW_WC + CONCATE_LAYER, :NUM_CLASSES].set(p["wc"])

    return {"fparams": f, "wslab": w.astype(jnp.bfloat16)}


# ----------------------------- pure-JAX reference ---------------------------
def baseline_reference(x, p):
    # full-f32 reference of the original PyTorch forward (eval mode).
    h = jnp.maximum(x @ p["wg"][None, :] + p["bg"], 0.0)      # (B, N, 8)
    h = h.reshape(x.shape[0], -1)                             # (B, N*8)
    h = jnp.maximum(h @ p["w1"] + p["b1"], 0.0)
    h = jnp.maximum(h @ p["w2"] + p["b2"], 0.0)
    h = jnp.maximum(h @ p["w3"] + p["b3"], 0.0)
    logits = h @ p["wc"] + p["bc"]
    return jax.nn.log_softmax(logits, axis=1)


# --------------------------------- main --------------------------------------
if __name__ == "__main__":
    key = jax.random.PRNGKey(0)
    kx, kp_key, kxb = jax.random.split(key, 3)

    params = init_params(kp_key)
    kparams = make_kernel_params(params)

    # small-batch path (gridless, whole-array VMEM)
    x = jax.random.normal(kx, (BATCH, NUM_NODE, 1), jnp.float32)
    out = jax.block_until_ready(baseline_forward(x, kparams))
    ref = baseline_reference(x, params)
    assert out.shape == (BATCH, NUM_CLASSES)
    # tolerance relaxed because MLP weights are bf16 in the kernel (f32 accum).
    assert jnp.allclose(out, ref, atol=2e-2, rtol=2e-2), "mismatch vs reference (B=2)"

    # batched path (grid over 256-row batch tiles, weights resident across steps)
    xb = jax.random.normal(kxb, (512, NUM_NODE, 1), jnp.float32)
    outb = jax.block_until_ready(baseline_forward(xb, kparams))
    refb = baseline_reference(xb, params)
    assert outb.shape == (512, NUM_CLASSES)
    assert jnp.allclose(outb, refb, atol=2e-2, rtol=2e-2), "mismatch vs reference (B=512)"

    # TODO(synk): cross-call DMA futures (P10) for weight residency across
    # separate pallas_calls in steady-state serving are not implemented here.

    print("KERNEL_OK")
</pallas_src>

<mosaic_0001>
module attributes {stable_mosaic.version = 11 : i64} {
  func.func @baseline_kernel(%arg0: memref<2x64xf32, #tpu.memory_space<vmem>>, %arg1: memref<72x512xf32, #tpu.memory_space<vmem>>, %arg2: memref<960x256xbf16, #tpu.memory_space<vmem>>, %arg3: memref<2x4xf32, #tpu.memory_space<vmem>>) attributes {dimension_semantics = [], scalar_prefetch = 0 : i64, scratch_operands = 0 : i64, tpu.core_type = #tpu.core_type<tc>} {
    %c0 = arith.constant 0 : index
    %c0_0 = arith.constant 0 : index
    %0 = vector.load %arg0[%c0, %c0_0] : memref<2x64xf32, #tpu.memory_space<vmem>>, vector<2x64xf32>
    %c0_1 = arith.constant 0 : index
    %c0_2 = arith.constant 0 : index
    %1 = vector.load %arg1[%c0_1, %c0_2] : memref<72x512xf32, #tpu.memory_space<vmem>>, vector<64x512xf32>
    %c64 = arith.constant 64 : index
    %c0_3 = arith.constant 0 : index
    %2 = vector.load %arg1[%c64, %c0_3] : memref<72x512xf32, #tpu.memory_space<vmem>>, vector<8x512xf32>
    %3 = vector.extract_strided_slice %2 {offsets = [0, 0], sizes = [1, 512], strides = [1, 1]} : vector<8x512xf32> to vector<1x512xf32>
    %4 = vector.extract_strided_slice %2 {offsets = [1, 0], sizes = [1, 256], strides = [1, 1]} : vector<8x512xf32> to vector<1x256xf32>
    %5 = vector.extract_strided_slice %2 {offsets = [2, 0], sizes = [1, 128], strides = [1, 1]} : vector<8x512xf32> to vector<1x128xf32>
    %6 = vector.extract_strided_slice %2 {offsets = [3, 0], sizes = [1, 64], strides = [1, 1]} : vector<8x512xf32> to vector<1x64xf32>
    %7 = vector.extract_strided_slice %2 {offsets = [4, 0], sizes = [1, 4], strides = [1, 1]} : vector<8x512xf32> to vector<1x4xf32>
    %cst = arith.constant dense<0.000000e+00> : vector<2x512xf32>
    %8 = tpu.matmul %0, %1, %cst {dimension_numbers = #tpu.dot_dimension_numbers<[1], [0], [0], [1], [0, 0, 1, 1], [], []>} : vector<2x64xf32>, vector<64x512xf32>, vector<2x512xf32> -> vector<2x512xf32>
    %9 = vector.broadcast %3 : vector<1x512xf32> to vector<2x512xf32>
    %10 = arith.addf %8, %9 : vector<2x512xf32>
    %cst_4 = arith.constant 0.000000e+00 : f32
    %11 = vector.broadcast %cst_4 : f32 to vector<2x512xf32>
    %12 = arith.maximumf %10, %11 : vector<2x512xf32>
    %c0_5 = arith.constant 0 : index
    %c0_6 = arith.constant 0 : index
    %13 = vector.load %arg2[%c0_5, %c0_6] : memref<960x256xbf16, #tpu.memory_space<vmem>>, vector<512x256xbf16>
    %14 = arith.truncf %12 : vector<2x512xf32> to vector<2x512xbf16>
    %cst_7 = arith.constant dense<0.000000e+00> : vector<2x256xf32>
    %15 = tpu.matmul %14, %13, %cst_7 {dimension_numbers = #tpu.dot_dimension_numbers<[1], [0], [0], [1], [0, 0, 1, 1], [], []>} : vector<2x512xbf16>, vector<512x256xbf16>, vector<2x256xf32> -> vector<2x256xf32>
    %16 = vector.broadcast %4 : vector<1x256xf32> to vector<2x256xf32>
    %17 = arith.addf %15, %16 : vector<2x256xf32>
    %cst_8 = arith.constant 0.000000e+00 : f32
    %18 = vector.broadcast %cst_8 : f32 to vector<2x256xf32>
    %19 = arith.maximumf %17, %18 : vector<2x256xf32>
    %c512 = arith.constant 512 : index
    %c0_9 = arith.constant 0 : index
    %20 = vector.load %arg2[%c512, %c0_9] : memref<960x256xbf16, #tpu.memory_space<vmem>>, vector<256x256xbf16>
    %21 = arith.truncf %19 : vector<2x256xf32> to vector<2x256xbf16>
    %cst_10 = arith.constant dense<0.000000e+00> : vector<2x256xf32>
    %22 = tpu.matmul %21, %20, %cst_10 {dimension_numbers = #tpu.dot_dimension_numbers<[1], [0], [0], [1], [0, 0, 1, 1], [], []>} : vector<2x256xbf16>, vector<256x256xbf16>, vector<2x256xf32> -> vector<2x256xf32>
    %23 = vector.extract_strided_slice %22 {offsets = [0, 0], sizes = [2, 128], strides = [1, 1]} : vector<2x256xf32> to vector<2x128xf32>
    %24 = vector.broadcast %5 : vector<1x128xf32> to vector<2x128xf32>
    %25 = arith.addf %23, %24 : vector<2x128xf32>
    %cst_11 = arith.constant 0.000000e+00 : f32
    %26 = vector.broadcast %cst_11 : f32 to vector<2x128xf32>
    %27 = arith.maximumf %25, %26 : vector<2x128xf32>
    %c768 = arith.constant 768 : index
    %c0_12 = arith.constant 0 : index
    %28 = vector.load %arg2[%c768, %c0_12] : memref<960x256xbf16, #tpu.memory_space<vmem>>, vector<128x256xbf16>
    %29 = arith.truncf %27 : vector<2x128xf32> to vector<2x128xbf16>
    %cst_13 = arith.constant dense<0.000000e+00> : vector<2x256xf32>
    %30 = tpu.matmul %29, %28, %cst_13 {dimension_numbers = #tpu.dot_dimension_numbers<[1], [0], [0], [1], [0, 0, 1, 1], [], []>} : vector<2x128xbf16>, vector<128x256xbf16>, vector<2x256xf32> -> vector<2x256xf32>
    %31 = vector.extract_strided_slice %30 {offsets = [0, 0], sizes = [2, 64], strides = [1, 1]} : vector<2x256xf32> to vector<2x64xf32>
    %32 = vector.broadcast %6 : vector<1x64xf32> to vector<2x64xf32>
    %33 = arith.addf %31, %32 : vector<2x64xf32>
    %cst_14 = arith.constant 0.000000e+00 : f32
    %34 = vector.broadcast %cst_14 : f32 to vector<2x64xf32>
    %35 = arith.maximumf %33, %34 : vector<2x64xf32>
    %c896 = arith.constant 896 : index
    %c0_15 = arith.constant 0 : index
    %36 = vector.load %arg2[%c896, %c0_15] : memref<960x256xbf16, #tpu.memory_space<vmem>>, vector<64x256xbf16>
    %37 = arith.truncf %35 : vector<2x64xf32> to vector<2x64xbf16>
    %cst_16 = arith.constant dense<0.000000e+00> : vector<2x256xf32>
    %38 = tpu.matmul %37, %36, %cst_16 {dimension_numbers = #tpu.dot_dimension_numbers<[1], [0], [0], [1], [0, 0, 1, 1], [], []>} : vector<2x64xbf16>, vector<64x256xbf16>, vector<2x256xf32> -> vector<2x256xf32>
    %39 = vector.extract_strided_slice %38 {offsets = [0, 0], sizes = [2, 4], strides = [1, 1]} : vector<2x256xf32> to vector<2x4xf32>
    %40 = vector.broadcast %7 : vector<1x4xf32> to vector<2x4xf32>
    %41 = arith.addf %39, %40 : vector<2x4xf32>
    %cst_17 = arith.constant dense<0xFF800000> : vector<2xf32>
    %42 = vector.multi_reduction <maximumf>, %41, %cst_17 [1] : vector<2x4xf32> to vector<2xf32>
    %43 = vector.shape_cast %42 : vector<2xf32> to vector<2x1xf32>
    %44 = vector.broadcast %43 : vector<2x1xf32> to vector<2x4xf32>
    %45 = arith.subf %41, %44 : vector<2x4xf32>
    %46 = math.exp %45 : vector<2x4xf32>
    %cst_18 = arith.constant dense<0.000000e+00> : vector<2xf32>
    %47 = vector.multi_reduction <add>, %46, %cst_18 [1] : vector<2x4xf32> to vector<2xf32>
    %48 = vector.shape_cast %47 : vector<2xf32> to vector<2x1xf32>
    %49 = math.log %48 : vector<2x1xf32>
    %50 = vector.broadcast %49 : vector<2x1xf32> to vector<2x4xf32>
    %51 = arith.subf %45, %50 : vector<2x4xf32>
    %c0_19 = arith.constant 0 : index
    %c0_20 = arith.constant 0 : index
    %52 = vector.load %arg3[%c0_19, %c0_20] : memref<2x4xf32, #tpu.memory_space<vmem>>, vector<2x4xf32>
    tpu.vector_store %arg3[%c0_19, %c0_20], %51 {strides = array<i32>} : memref<2x4xf32, #tpu.memory_space<vmem>>, vector<2x4xf32>,
    return
  }
}

</mosaic_0001>

<bundles_post_ra>
// kernel: baseline_forward.1
= control target key start
LH: loop header
LB: loop body
LE: loop exit
PB: predicated region body
PF: predicated region fallthrough
CT: control target
= control target key end

     0   :  { %8 = vsyncpa [#allocation3], 0  ;;  %s1764_s0 = inlined_call_operand.vmem [shape: f32[2,64], index: 0, kind: input, shape index: {}]   ;;  %s1765_s1 = inlined_call_operand.hbm [shape: f32[72,512], index: 1, kind: input, shape index: {}]   ;;  %s1766_s2 = inlined_call_operand.hbm [shape: bf16[960,256], index: 2, kind: input, shape index: {}]   ;;  %s1767_s3 = inlined_call_operand.hbm [shape: f32[2,4], index: 3, kind: output, shape index: {}]  }
   0x1   :  { %9 = vsyncpa [#allocation6], 0 }
   0x2   :  { %10 = vsyncpa [#allocation4], 0  ;;  %s1663_s12 = smov [#allocation2]   ;;  %s1591_s16 = scalar_lea.hbm %s1765_s1, 4608 }
   0x3   :  { %s18_s13 = sshll.u32 %s1663_s12, 4  ;;  %p1592_p0 = scmp.ne.s32.totalorder %s1765_s1, %s1591_s16  ;;  %s19_s13 = int_to_ptr.vmem [resolvable:$true] %s18_s13 }
   0x4   :  { %p1595_p1 = scmp.lt.u32.totalorder %s1591_s16, %s1765_s1 }
   0x6   :  { %p1597_p2 = pnand %p1595_p1, %p1592_p0 }
   0x8   :  { %1600 = shalt.err (!%p1597_p2)
}
   0x9   :  { %s1601_s21 = scalar_lea.vmem %s19_s13, 4608  ;;  %p1606_p4 = scmp.lt.s32.totalorder %s19_s13, %s19_s13 }
   0xa   :  { %p1602_p3 = scmp.ne.s32.totalorder %s19_s13, %s1601_s21  ;;  %p1607_p5 = scmp.lt.s32.totalorder %s1601_s21, %s1601_s21 }
   0xc   :  { %p1608_p6 = por %p1607_p5, %p1606_p4 }
   0xe   :  { %p1609_p7 = pnand %p1608_p6, %p1602_p3 }
  0x10   :  { %1612 = shalt.err (!%p1609_p7)
}
  0x11   :  { %s1664_s22 = smov 512   ;;  %s1665_s23 = smov 32  }
  0x12   :  { %24 = dma.hbm_to_vmem [thread:$0]  %s1765_s1, 4608, %s19_s13, [#allocation3], %s1664_s22, %s1664_s22, %s1665_s23  }
  0x13   :  { %s1666_s26 = smov [#allocation5]   ;;  %s1613_s30 = scalar_lea.hbm %s1766_s2, 15360 }
  0x14   :  { %s30_s27 = sshll.u32 %s1666_s26, 4  ;;  %p1614_p8 = scmp.ne.s32.totalorder %s1766_s2, %s1613_s30  ;;  %s31_s27 = int_to_ptr.vmem [resolvable:$true] %s30_s27 }
  0x15   :  { %p1617_p9 = scmp.lt.u32.totalorder %s1613_s30, %s1766_s2 }
  0x17   :  { %p1619_p10 = pnand %p1617_p9, %p1614_p8 }
  0x19   :  { %1622 = shalt.err (!%p1619_p10)
}
  0x1a   :  { %s1623_s8 = scalar_lea.vmem %s31_s27, 15360  ;;  %p1628_p12 = scmp.lt.s32.totalorder %s31_s27, %s31_s27 }
  0x1b   :  { %p1624_p11 = scmp.ne.s32.totalorder %s31_s27, %s1623_s8  ;;  %p1629_p13 = scmp.lt.s32.totalorder %s1623_s8, %s1623_s8 }
  0x1d   :  { %p1630_p0 = por %p1629_p13, %p1628_p12 }
  0x1f   :  { %p1631_p1 = pnand %p1630_p0, %p1624_p11 }
  0x21   :  { %1634 = shalt.err (!%p1631_p1)
}
  0x22   :  { %s1667_s1 = smov 128   ;;  %s1668_s9 = smov 8  }
  0x23   :  { %36 = dma.hbm_to_vmem [thread:$0]  %s1766_s2, 15360, %s31_s27, [#allocation6], %s1667_s1, %s1667_s1, %s1668_s9  }
  0x24   :  { %1657 = dma.done.wait [#allocation3], 4608  }
  0x25   :  { %1658 = vsyncadd [#allocation3], 4294962688 }
  0x26   :  { %1659 = dma.done.wait [#allocation6], 15360  }
  0x27   :  { %1660 = vsyncadd [#allocation6], 4294951936  ;;  %v1669_v0 = vmov 0.0   ;;  %v46_v1 = vld [vmem:[#allocation2 + $0x8] sm:$0xff]  ;;  %v45_v3 = vld [vmem:[#allocation2] sm:$0xff]  ;;  %vm97_vm0 = vcmask 523264  }
  0x28   :  { %165 = vmatprep.mubr.f32.mxu0 %v1669_v0  ;;  %236 = vmatprep.mubr.f32.mxu1 %v1669_v0  ;;  %v50_v2 = vld [vmem:[#allocation2 + $0x28] sm:$0xff]  ;;  %v49_v5 = vld [vmem:[#allocation2 + $0x20] sm:$0xff]  ;;  %v48_v20 = vld [vmem:[#allocation2 + $0x18] sm:$0xff]  ;;  %vm1207_vm1 = vcmask 25600  }
  0x29   :  { %v1360_v4 = vpack.c.bf16 %v50_v2, %v46_v1  ;;  %v54_v6 = vld [vmem:[#allocation2 + $0x48] sm:$0xff]  ;;  %v1362_v8 = vpack.c.bf16 %v49_v5, %v45_v3  ;;  %v53_v10 = vld [vmem:[#allocation2 + $0x40] sm:$0xff]  ;;  %v52_v21 = vld [vmem:[#allocation2 + $0x38] sm:$0xff] }
  0x2a   :  { %v58_v7 = vld [vmem:[#allocation2 + $0x68] sm:$0xff]  ;;  %v57_v11 = vld [vmem:[#allocation2 + $0x60] sm:$0xff]  ;;  %v47_v22 = vld [vmem:[#allocation2 + $0x10] sm:$0xff]  ;;  %v1376_v24 = vpack.c.bf16 %v52_v21, %v48_v20 }
  0x2b   :  { %v1364_v9 = vpack.c.bf16 %v58_v7, %v54_v6  ;;  %v62_v12 = vld [vmem:[#allocation2 + $0x88] sm:$0xff]  ;;  %1361 = vmatprep.subr.bf16.mxu0 %v1360_v4  ;;  %v1366_v14 = vpack.c.bf16 %v57_v11, %v53_v10  ;;  %v61_v15 = vld [vmem:[#allocation2 + $0x80] sm:$0xff]  ;;  %v51_v23 = vld [vmem:[#allocation2 + $0x30] sm:$0xff] }
  0x2c   :  { %v66_v13 = vld [vmem:[#allocation2 + $0xa8] sm:$0xff]  ;;  %1363 = vmatpush1.bf16.msra.mxu0 %v1362_v8  ;;  %v65_v16 = vld [vmem:[#allocation2 + $0xa0] sm:$0xff]  ;;  %v1378_v25 = vpack.c.bf16 %v51_v23, %v47_v22  ;;  %v56_v26 = vld [vmem:[#allocation2 + $0x58] sm:$0xff]  ;;  %1377 = vmatprep.subr.bf16.mxu1 %v1376_v24 }
  0x2d   :  { %1365 = vmatprep.subr.bf16.mxu0 %v1364_v9  ;;  %v1368_v17 = vpack.c.bf16 %v66_v13, %v62_v12  ;;  %v70_v18 = vld [vmem:[#allocation2 + $0xc8] sm:$0xff]  ;;  %v60_v27 = vld [vmem:[#allocation2 + $0x78] sm:$0xff]  ;;  %v55_v28 = vld [vmem:[#allocation2 + $0x50] sm:$0xff]  ;;  %v1370_v29 = vpack.c.bf16 %v65_v16, %v61_v15 }
  0x2e   :  { %v74_v19 = vld [vmem:[#allocation2 + $0xe8] sm:$0xff]  ;;  %v1380_v30 = vpack.c.bf16 %v60_v27, %v56_v26  ;;  %v59_v31 = vld [vmem:[#allocation2 + $0x70] sm:$0xff]  ;;  %v64_v32 = vld [vmem:[#allocation2 + $0x98] sm:$0xff]  ;;  %1379 = vmatpush1.bf16.msra.mxu1 %v1378_v25 }
  0x2f   :  { %v68_v33 = vld [vmem:[#allocation2 + $0xb8] sm:$0xff]  ;;  %v1372_v34 = vpack.c.bf16 %v74_v19, %v70_v18  ;;  %v69_v35 = vld [vmem:[#allocation2 + $0xc0] sm:$0xff]  ;;  %v1382_v37 = vpack.c.bf16 %v59_v31, %v55_v28  ;;  %v63_v38 = vld [vmem:[#allocation2 + $0x90] sm:$0xff] }
  0x30   :  { %1367 = vmatpush1.bf16.msra.mxu0 %v1366_v14  ;;  %v73_v36 = vld [vmem:[#allocation2 + $0xe0] sm:$0xff]  ;;  %v67_v39 = vld [vmem:[#allocation2 + $0xb0] sm:$0xff]  ;;  %1381 = vmatprep.subr.bf16.mxu1 %v1380_v30  ;;  %v1384_v40 = vpack.c.bf16 %v68_v33, %v64_v32  ;;  %v72_v41 = vld [vmem:[#allocation2 + $0xd8] sm:$0xff] }
  0x31   :  { %1369 = vmatprep.subr.bf16.mxu0 %v1368_v17  ;;  %v1374_v42 = vpack.c.bf16 %v73_v36, %v69_v35  ;;  %v76_v43 = vld [vmem:[#allocation2 + $0xf8] sm:$0xff]  ;;  %v1409_v44 = vld [vmem:[#allocation5 + $0x4] ss:$8 sps:$4 sm:$0xff]   ;;  %v44_v45 = vld [vmem:[%s1764_s0] sm:$0x3]  ;;  %v1386_v46 = vpack.c.bf16 %v67_v39, %v63_v38  ;;  %s1671_s0 = smov [#allocation7]  }
  0x32   :  { %1383 = vmatpush1.bf16.msra.mxu1 %v1382_v37  ;;  %v71_v47 = vld [vmem:[#allocation2 + $0xd0] sm:$0xff]  ;;  %v1388_v48 = vpack.c.bf16 %v76_v43, %v72_v41  ;;  %v1407_v50 = vld [vmem:[#allocation5] ss:$8 sps:$4 sm:$0xff]   ;;  %v1415_v54 = vld [vmem:[#allocation5 + $0x24] ss:$8 sps:$4 sm:$0xff]   ;;  %v81_v41 = vlaneseq  ;;  %s1227_s13 = sshll.u32 %s1671_s0, 4  ;;  %s1228_s13 = int_to_ptr.vmem [resolvable:$true] %s1227_s13 }
  0x33   :  { %1385 = vmatprep.subr.bf16.mxu1 %v1384_v40  ;;  %v75_v49 = vld [vmem:[#allocation2 + $0xf0] sm:$0xff]  ;;  %v1413_v55 = vld [vmem:[#allocation5 + $0x20] ss:$8 sps:$4 sm:$0xff]   ;;  %v1421_v58 = vld [vmem:[#allocation5 + $0x44] ss:$8 sps:$4 sm:$0xff]   ;;  %s1635_s14 = scalar_lea.vmem %s1228_s13, 32  ;;  %p1640_p3 = scmp.lt.s32.totalorder %s1228_s13, %s1228_s13 }
  0x34   :  { %1371 = vmatpush1.bf16.msra.mxu0 %v1370_v29  ;;  %v1412_v51 = vld [vmem:[#allocation5 + $0x14] ss:$8 sps:$4 sm:$0xff]   ;;  %v1390_v52 = vpack.c.bf16 %v75_v49, %v71_v47  ;;  %v1410_v53 = vld [vmem:[#allocation5 + $0x10] ss:$8 sps:$4 sm:$0xff]   ;;  %v1419_v59 = vld [vmem:[#allocation5 + $0x40] ss:$8 sps:$4 sm:$0xff]   ;;  %p1636_p2 = scmp.ne.s32.totalorder %s1228_s13, %s1635_s14  ;;  %p1641_p4 = scmp.lt.s32.totalorder %s1635_s14, %s1635_s14 }
  0x35   :  { %1373 = vmatprep.subr.bf16.mxu0 %v1372_v34  ;;  %v1418_v56 = vld [vmem:[#allocation5 + $0x34] ss:$8 sps:$4 sm:$0xff]   ;;  %v1416_v57 = vld [vmem:[#allocation5 + $0x30] ss:$8 sps:$4 sm:$0xff]   ;;  %v1427_v62 = vld [vmem:[#allocation5 + $0x64] ss:$8 sps:$4 sm:$0xff]  }
  0x36   :  { %1387 = vmatpush1.bf16.msra.mxu1 %v1386_v46  ;;  %v1424_v60 = vld [vmem:[#allocation5 + $0x54] ss:$8 sps:$4 sm:$0xff]   ;;  %v1422_v61 = vld [vmem:[#allocation5 + $0x50] ss:$8 sps:$4 sm:$0xff]   ;;  %v1425_v63 = vld [vmem:[#allocation5 + $0x60] ss:$8 sps:$4 sm:$0xff]   ;;  %p1642_p5 = por %p1641_p4, %p1640_p3 }
  0x37   :  { %1389 = vmatprep.subr.bf16.mxu1 %v1388_v48  ;;  %v1430_v0 = vld [vmem:[#allocation5 + $0x74] ss:$8 sps:$4 sm:$0xff]   ;;  %v1428_v1 = vld [vmem:[#allocation5 + $0x70] ss:$8 sps:$4 sm:$0xff]   ;;  %v1433_v2 = vld [vmem:[#allocation5 + $0x84] ss:$8 sps:$4 sm:$0xff]  }
  0x38   :  { %1375 = vmatpush1.bf16.msra.mxu0 %v1374_v42  ;;  %v1431_v3 = vld [vmem:[#allocation5 + $0x80] ss:$8 sps:$4 sm:$0xff]   ;;  %v1436_v4 = vld [vmem:[#allocation5 + $0x94] ss:$8 sps:$4 sm:$0xff]   ;;  %v1434_v5 = vld [vmem:[#allocation5 + $0x90] ss:$8 sps:$4 sm:$0xff]   ;;  %p1643_p6 = pnand %p1642_p5, %p1636_p2 }
  0x39   :  { %643 = vmatprep.subr.bf16.mxu0 %v1409_v44  ;;  %v1439_v6 = vld [vmem:[#allocation5 + $0xa4] ss:$8 sps:$4 sm:$0xff]   ;;  %v1437_v7 = vld [vmem:[#allocation5 + $0xa0] ss:$8 sps:$4 sm:$0xff]   ;;  %v1442_v8 = vld [vmem:[#allocation5 + $0xb4] ss:$8 sps:$4 sm:$0xff]  }
  0x3a   :  { %1391 = vmatpush1.bf16.msra.mxu1 %v1390_v52  ;;  %v1440_v9 = vld [vmem:[#allocation5 + $0xb0] ss:$8 sps:$4 sm:$0xff]   ;;  %v1445_v10 = vld [vmem:[#allocation5 + $0xc4] ss:$8 sps:$4 sm:$0xff]   ;;  %v1443_v11 = vld [vmem:[#allocation5 + $0xc0] ss:$8 sps:$4 sm:$0xff]  }
  0x3b   :  { %1237 = vmatmul.mubr.msk.f32.vlgmr.msra.gmra.mrb[0].mxu0 %vm97_vm0, %v44_v45  ;;  %v1448_v12 = vld [vmem:[#allocation5 + $0xd4] ss:$8 sps:$4 sm:$0xff]   ;;  %v1446_v13 = vld [vmem:[#allocation5 + $0xd0] ss:$8 sps:$4 sm:$0xff]   ;;  %v1451_v14 = vld [vmem:[#allocation5 + $0xe4] ss:$8 sps:$4 sm:$0xff]  }
  0x3c   :  { %644 = vmatpush1.bf16.msra.mxu0 %v1407_v50  ;;  %v1449_v15 = vld [vmem:[#allocation5 + $0xe0] ss:$8 sps:$4 sm:$0xff]   ;;  %v1454_v16 = vld [vmem:[#allocation5 + $0xf4] ss:$8 sps:$4 sm:$0xff]   ;;  %v1452_v17 = vld [vmem:[#allocation5 + $0xf0] ss:$8 sps:$4 sm:$0xff]  }
  0x3d   :  { %645 = vmatprep.subr.bf16.mxu0 %v1412_v51  ;;  %1238 = vmatmul.mubr.msk.f32.vlgmr.msra.gmra.mrb[0].mxu1 %vm97_vm0, %v44_v45  ;;  %v1457_v18 = vld [vmem:[#allocation5 + $0x104] ss:$8 sps:$4 sm:$0xff]   ;;  %v1503_v19 = vld [vmem:[#allocation5 + $0x200] ss:$8 sps:$4 sm:$0xff]   ;;  %v1508_v21 = vld [vmem:[#allocation5 + $0x214] ss:$8 sps:$4 sm:$0xff]  }
  0x3e   :  { %v1505_v20 = vld [vmem:[#allocation5 + $0x204] ss:$8 sps:$4 sm:$0xff]   ;;  %v1506_v22 = vld [vmem:[#allocation5 + $0x210] ss:$8 sps:$4 sm:$0xff]   ;;  %v1509_v24 = vld [vmem:[#allocation5 + $0x220] ss:$8 sps:$4 sm:$0xff]  }
  0x3f   :  { %921 = vmatprep.subr.bf16.mxu1 %v1505_v20  ;;  %v1511_v23 = vld [vmem:[#allocation5 + $0x224] ss:$8 sps:$4 sm:$0xff]   ;;  %v1514_v25 = vld [vmem:[#allocation5 + $0x234] ss:$8 sps:$4 sm:$0xff]   ;;  %v1512_v26 = vld [vmem:[#allocation5 + $0x230] ss:$8 sps:$4 sm:$0xff]  }
  0x40   :  { %646 = vmatpush1.bf16.msra.mxu0 %v1410_v53  ;;  %922 = vmatpush1.bf16.msra.mxu1 %v1503_v19  ;;  %v1517_v27 = vld [vmem:[#allocation5 + $0x244] ss:$8 sps:$4 sm:$0xff]   ;;  %v1515_v28 = vld [vmem:[#allocation5 + $0x240] ss:$8 sps:$4 sm:$0xff]   ;;  %v1520_v29 = vld [vmem:[#allocation5 + $0x254] ss:$8 sps:$4 sm:$0xff]  }
  0x41   :  { %647 = vmatprep.subr.bf16.mxu0 %v1415_v54  ;;  %923 = vmatprep.subr.bf16.mxu1 %v1508_v21  ;;  %v1518_v30 = vld [vmem:[#allocation5 + $0x250] ss:$8 sps:$4 sm:$0xff]   ;;  %v1523_v31 = vld [vmem:[#allocation5 + $0x264] ss:$8 sps:$4 sm:$0xff]   ;;  %v1521_v32 = vld [vmem:[#allocation5 + $0x260] ss:$8 sps:$4 sm:$0xff]  }
  0x42   :  { %v1526_v33 = vld [vmem:[#allocation5 + $0x274] ss:$8 sps:$4 sm:$0xff]   ;;  %v1524_v34 = vld [vmem:[#allocation5 + $0x270] ss:$8 sps:$4 sm:$0xff]   ;;  %v1529_v35 = vld [vmem:[#allocation5 + $0x284] ss:$8 sps:$4 sm:$0xff]  }
  0x43   :  { %v1527_v36 = vld [vmem:[#allocation5 + $0x280] ss:$8 sps:$4 sm:$0xff]   ;;  %v1532_v37 = vld [vmem:[#allocation5 + $0x294] ss:$8 sps:$4 sm:$0xff]   ;;  %v1530_v38 = vld [vmem:[#allocation5 + $0x290] ss:$8 sps:$4 sm:$0xff]  }
  0x44   :  { %648 = vmatpush1.bf16.msra.mxu0 %v1413_v55  ;;  %924 = vmatpush1.bf16.msra.mxu1 %v1506_v22  ;;  %v1535_v39 = vld [vmem:[#allocation5 + $0x2a4] ss:$8 sps:$4 sm:$0xff]   ;;  %v1533_v40 = vld [vmem:[#allocation5 + $0x2a0] ss:$8 sps:$4 sm:$0xff]   ;;  %v1538_v42 = vld [vmem:[#allocation5 + $0x2b4] ss:$8 sps:$4 sm:$0xff]  }
  0x45   :  { %649 = vmatprep.subr.bf16.mxu0 %v1418_v56  ;;  %925 = vmatprep.subr.bf16.mxu1 %v1511_v23  ;;  %v1536_v43 = vld [vmem:[#allocation5 + $0x2b0] ss:$8 sps:$4 sm:$0xff]   ;;  %v1721_v44 = vshrl.u32 %v81_v41, 7  ;;  %v1541_v45 = vld [vmem:[#allocation5 + $0x2c4] ss:$8 sps:$4 sm:$0xff]  }
  0x46   :  { %v1539_v46 = vld [vmem:[#allocation5 + $0x2c0] ss:$8 sps:$4 sm:$0xff]   ;;  %v1544_v48 = vld [vmem:[#allocation5 + $0x2d4] ss:$8 sps:$4 sm:$0xff]   ;;  %v1542_v51 = vld [vmem:[#allocation5 + $0x2d0] ss:$8 sps:$4 sm:$0xff]  }
  0x47   :  { %v1724_v47 = vsub.s32 0, %v1721_v44  ;;  %v1726_v49 = vld [vmem:[#allocation2 + $0x100] sm:$0xff]  ;;  %v1728_v50 = vld [vmem:[#allocation2 + $0x108] sm:$0xff]  ;;  %v1476_v19 = vld [vmem:[#allocation5 + $0x170] ss:$8 sps:$4 sm:$0xff]  }
  0x48   :  { %650 = vmatpush1.bf16.msra.mxu0 %v1416_v57  ;;  %926 = vmatpush1.bf16.msra.mxu1 %v1509_v24  ;;  %v80_v57 = vld [vmem:[#allocation2 + $0x118] sm:$0xff]  ;;  %v1481_v20 = vld [vmem:[#allocation5 + $0x184] ss:$8 sps:$4 sm:$0xff]   ;;  %v1479_v21 = vld [vmem:[#allocation5 + $0x180] ss:$8 sps:$4 sm:$0xff]  }
  0x49   :  { %651 = vmatprep.subr.bf16.mxu0 %v1421_v58  ;;  %927 = vmatprep.subr.bf16.mxu1 %v1514_v25  ;;  %v84_v52 = vrot.slane %v1726_v49, %v1724_v47  ;;  %v88_v53 = vrot.slane %v1728_v50, %v1724_v47  ;;  %v1484_v22 = vld [vmem:[#allocation5 + $0x194] ss:$8 sps:$4 sm:$0xff]   ;;  %v1482_v23 = vld [vmem:[#allocation5 + $0x190] ss:$8 sps:$4 sm:$0xff]   ;;  %v1487_v24 = vld [vmem:[#allocation5 + $0x1a4] ss:$8 sps:$4 sm:$0xff]  }
  0x4a   :  { %v1485_v25 = vld [vmem:[#allocation5 + $0x1a0] ss:$8 sps:$4 sm:$0xff]   ;;  %v1547_v41 = vld [vmem:[#allocation5 + $0x2e4] ss:$8 sps:$4 sm:$0xff]  }
  0x4c   :  { %652 = vmatpush1.bf16.msra.mxu0 %v1419_v59  ;;  %928 = vmatpush1.bf16.msra.mxu1 %v1512_v26  ;;  %v1490_v26 = vld [vmem:[#allocation5 + $0x1b4] ss:$8 sps:$4 sm:$0xff]  }
  0x4d   :  { %653 = vmatprep.subr.bf16.mxu0 %v1424_v60  ;;  %929 = vmatprep.subr.bf16.mxu1 %v1517_v27  ;;  %v1488_v27 = vld [vmem:[#allocation5 + $0x1b0] ss:$8 sps:$4 sm:$0xff]  }
  0x50   :  { %654 = vmatpush1.bf16.msra.mxu0 %v1422_v61  ;;  %930 = vmatpush1.bf16.msra.mxu1 %v1515_v28  ;;  %v96_v61 = vrot.slane %v80_v57, %v1724_v47  ;;  %v1493_v28 = vld [vmem:[#allocation5 + $0x1c4] ss:$8 sps:$4 sm:$0xff]  }
  0x51   :  { %655 = vmatprep.subr.bf16.mxu0 %v1427_v62  ;;  %931 = vmatprep.subr.bf16.mxu1 %v1520_v29  ;;  %v1491_v29 = vld [vmem:[#allocation5 + $0x1c0] ss:$8 sps:$4 sm:$0xff]  }
  0x54   :  { %656 = vmatpush1.bf16.msra.mxu0 %v1425_v63  ;;  %932 = vmatpush1.bf16.msra.mxu1 %v1518_v30  ;;  %v1455_v63 = vld [vmem:[#allocation5 + $0x100] ss:$8 sps:$4 sm:$0xff]   ;;  %v1496_v30 = vld [vmem:[#allocation5 + $0x1d4] ss:$8 sps:$4 sm:$0xff]  }
  0x55   :  { %657 = vmatprep.subr.bf16.mxu0 %v1430_v0  ;;  %933 = vmatprep.subr.bf16.mxu1 %v1523_v31  ;;  %v79_v31 = vld [vmem:[#allocation2 + $0x110] sm:$0xff] }
  0x58   :  { %658 = vmatpush1.bf16.msra.mxu0 %v1428_v1  ;;  %934 = vmatpush1.bf16.msra.mxu1 %v1521_v32  ;;  %v1494_v32 = vld [vmem:[#allocation5 + $0x1d0] ss:$8 sps:$4 sm:$0xff]  }
  0x59   :  { %659 = vmatprep.subr.bf16.mxu0 %v1433_v2  ;;  %935 = vmatprep.subr.bf16.mxu1 %v1526_v33  ;;  %v1460_v2 = vld [vmem:[#allocation5 + $0x114] ss:$8 sps:$4 sm:$0xff]   ;;  %v92_v33 = vrot.slane %v79_v31, %v1724_v47  ;;  %v317_v47 = vsub.s32 1, %v1721_v44 }
  0x5c   :  { %660 = vmatpush1.bf16.msra.mxu0 %v1431_v3  ;;  %936 = vmatpush1.bf16.msra.mxu1 %v1524_v34  ;;  %v1499_v34 = vld [vmem:[#allocation5 + $0x1e4] ss:$8 sps:$4 sm:$0xff]  }
  0x5d   :  { %661 = vmatprep.subr.bf16.mxu0 %v1436_v4  ;;  %937 = vmatprep.subr.bf16.mxu1 %v1529_v35  ;;  %v1497_v35 = vld [vmem:[#allocation5 + $0x1e0] ss:$8 sps:$4 sm:$0xff]  }
  0x60   :  { %662 = vmatpush1.bf16.msra.mxu0 %v1434_v5  ;;  %938 = vmatpush1.bf16.msra.mxu1 %v1527_v36  ;;  %v1458_v5 = vld [vmem:[#allocation5 + $0x110] ss:$8 sps:$4 sm:$0xff]  }
  0x61   :  { %663 = vmatprep.subr.bf16.mxu0 %v1439_v6  ;;  %939 = vmatprep.subr.bf16.mxu1 %v1532_v37  ;;  %v1502_v37 = vld [vmem:[#allocation5 + $0x1f4] ss:$8 sps:$4 sm:$0xff]  }
  0x64   :  { %664 = vmatpush1.bf16.msra.mxu0 %v1437_v7  ;;  %940 = vmatpush1.bf16.msra.mxu1 %v1530_v38  ;;  %v1463_v7 = vld [vmem:[#allocation5 + $0x124] ss:$8 sps:$4 sm:$0xff]   ;;  %v1500_v38 = vld [vmem:[#allocation5 + $0x1f0] ss:$8 sps:$4 sm:$0xff]  }
  0x65   :  { %665 = vmatprep.subr.bf16.mxu0 %v1442_v8  ;;  %941 = vmatprep.subr.bf16.mxu1 %v1535_v39 }
  0x68   :  { %666 = vmatpush1.bf16.msra.mxu0 %v1440_v9  ;;  %942 = vmatpush1.bf16.msra.mxu1 %v1533_v40  ;;  %v1461_v9 = vld [vmem:[#allocation5 + $0x120] ss:$8 sps:$4 sm:$0xff]  }
  0x69   :  { %667 = vmatprep.subr.bf16.mxu0 %v1445_v10  ;;  %943 = vmatprep.subr.bf16.mxu1 %v1538_v42  ;;  %v1466_v10 = vld [vmem:[#allocation5 + $0x134] ss:$8 sps:$4 sm:$0xff]   ;;  %v1545_v42 = vld [vmem:[#allocation5 + $0x2e0] ss:$8 sps:$4 sm:$0xff]  }
  0x6c   :  { %668 = vmatpush1.bf16.msra.mxu0 %v1443_v11  ;;  %944 = vmatpush1.bf16.msra.mxu1 %v1536_v43  ;;  %v1464_v11 = vld [vmem:[#allocation5 + $0x130] ss:$8 sps:$4 sm:$0xff]   ;;  %v1550_v43 = vld [vmem:[#allocation5 + $0x2f4] ss:$8 sps:$4 sm:$0xff]  }
  0x6d   :  { %669 = vmatprep.subr.bf16.mxu0 %v1448_v12  ;;  %945 = vmatprep.subr.bf16.mxu1 %v1541_v45  ;;  %v1469_v12 = vld [vmem:[#allocation5 + $0x144] ss:$8 sps:$4 sm:$0xff]   ;;  %v1548_v45 = vld [vmem:[#allocation5 + $0x2f0] ss:$8 sps:$4 sm:$0xff]  }
  0x70   :  { %670 = vmatpush1.bf16.msra.mxu0 %v1446_v13  ;;  %946 = vmatpush1.bf16.msra.mxu1 %v1539_v46  ;;  %v1467_v13 = vld [vmem:[#allocation5 + $0x140] ss:$8 sps:$4 sm:$0xff]   ;;  %v1553_v46 = vld [vmem:[#allocation5 + $0x304] ss:$8 sps:$4 sm:$0xff]  }
  0x71   :  { %671 = vmatprep.subr.bf16.mxu0 %v1451_v14  ;;  %947 = vmatprep.subr.bf16.mxu1 %v1544_v48  ;;  %v1472_v14 = vld [vmem:[#allocation5 + $0x154] ss:$8 sps:$4 sm:$0xff]   ;;  %v318_v48 = vrot.slane %v1726_v49, %v317_v47 }
  0x74   :  { %672 = vmatpush1.bf16.msra.mxu0 %v1449_v15  ;;  %948 = vmatpush1.bf16.msra.mxu1 %v1542_v51  ;;  %v1470_v15 = vld [vmem:[#allocation5 + $0x150] ss:$8 sps:$4 sm:$0xff]   ;;  %v322_v51 = vrot.slane %v1728_v50, %v317_v47  ;;  %v1557_v50 = vld [vmem:[#allocation5 + $0x320] ss:$8 sps:$4 sm:$0xff]  }
  0x75   :  { %673 = vmatprep.subr.bf16.mxu0 %v1454_v16  ;;  %v1475_v16 = vld [vmem:[#allocation5 + $0x164] ss:$8 sps:$4 sm:$0xff]   ;;  %949 = vmatprep.subr.bf16.mxu1 %v1547_v41 }
  0x78   :  { %674 = vmatpush1.bf16.msra.mxu0 %v1452_v17  ;;  %v1473_v17 = vld [vmem:[#allocation5 + $0x160] ss:$8 sps:$4 sm:$0xff]   ;;  %950 = vmatpush1.bf16.msra.mxu1 %v1545_v42 }
  0x79   :  { %684 = vmatprep.subr.bf16.mxu0 %v1457_v18  ;;  %v1478_v18 = vld [vmem:[#allocation5 + $0x174] ss:$8 sps:$4 sm:$0xff]   ;;  %951 = vmatprep.subr.bf16.mxu1 %v1550_v43 }
  0x7c   :  { %952 = vmatpush1.bf16.msra.mxu1 %v1548_v45 }
  0x7d   :  { %1064 = vmatprep.subr.bf16.mxu1 %v1553_v46 }
 0x10e   :  { %v167_v54 = vpop.f32.mrb[0].mxu0 }
 0x10f   :  { %v168_v55 = vadd.f32 %v167_v54, %v84_v52  ;;  %v169_v56 = vpop.f32.mrb[1].mxu0 }
 0x110   :  { %v170_v58 = vadd.f32 %v169_v56, %v88_v53  ;;  %v1735_v0 = vpop.f32.mrb[0].mxu1 }
 0x111   :  { %v243_v59 = vmax.f32 %v168_v55, 0.0  ;;  %v240_v3 = vpop.f32.mrb[1].mxu1  ;;  %v239_v36 = vadd.f32 %v1735_v0, %v92_v33  ;;  %v1554_v0 = vld [vmem:[#allocation5 + $0x310] ss:$8 sps:$4 sm:$0xff]  }
 0x112   :  { %v244_v60 = vmax.f32 %v170_v58, 0.0  ;;  %v241_v4 = vadd.f32 %v240_v3, %v96_v61  ;;  %v1551_v61 = vld [vmem:[#allocation5 + $0x300] ss:$8 sps:$4 sm:$0xff]   ;;  %v1560_v3 = vld [vmem:[#allocation5 + $0x330] ss:$8 sps:$4 sm:$0xff]  }
 0x113   :  { %v311_v1 = vpack.c.bf16 %v243_v59, %v243_v59  ;;  %v245_v39 = vmax.f32 %v239_v36, 0.0 }
 0x114   :  { %v312_v62 = vpack.c.bf16 %v244_v60, %v244_v60  ;;  %v246_v6 = vmax.f32 %v241_v4, 0.0  ;;  %v1565_v4 = vld [vmem:[#allocation5 + $0x344] ss:$8 sps:$4 sm:$0xff]  }
 0x115   :  { %v313_v40 = vpack.c.bf16 %v245_v39, %v245_v39  ;;  %v1204_v39 = vsub.s32 4, %v1721_v44 }
 0x116   :  { %675 = vmatprep.mubr.bf16.mxu0 %v312_v62  ;;  %v314_v8 = vpack.c.bf16 %v246_v6, %v246_v6  ;;  %v1568_v6 = vld [vmem:[#allocation5 + $0x354] ss:$8 sps:$4 sm:$0xff]  }
 0x117   :  { %676 = vmatmul.mubr.bf16.vlgmr.msra.gmra.mrb[4].mxu0 %v311_v1  ;;  %v1559_v1 = vld [vmem:[#allocation5 + $0x324] ss:$8 sps:$4 sm:$0xff]  }
 0x118   :  { %685 = vmatpush1.bf16.msra.mxu0 %v1455_v63  ;;  %716 = vmatprep.mubr.bf16.mxu0 %v314_v8  ;;  %v1556_v63 = vld [vmem:[#allocation5 + $0x314] ss:$8 sps:$4 sm:$0xff]   ;;  %v1571_v8 = vld [vmem:[#allocation5 + $0x364] ss:$8 sps:$4 sm:$0xff]  }
 0x119   :  { %686 = vmatprep.subr.bf16.mxu0 %v1460_v2  ;;  %v1562_v2 = vld [vmem:[#allocation5 + $0x334] ss:$8 sps:$4 sm:$0xff]  }
 0x11c   :  { %687 = vmatpush1.bf16.msra.mxu0 %v1458_v5  ;;  %v1563_v5 = vld [vmem:[#allocation5 + $0x340] ss:$8 sps:$4 sm:$0xff]  }
 0x11d   :  { %688 = vmatprep.subr.bf16.mxu0 %v1463_v7  ;;  %v1566_v7 = vld [vmem:[#allocation5 + $0x350] ss:$8 sps:$4 sm:$0xff]  }
 0x120   :  { %689 = vmatpush1.bf16.msra.mxu0 %v1461_v9  ;;  %v1569_v9 = vld [vmem:[#allocation5 + $0x360] ss:$8 sps:$4 sm:$0xff]  }
 0x121   :  { %690 = vmatprep.subr.bf16.mxu0 %v1466_v10  ;;  %v1574_v10 = vld [vmem:[#allocation5 + $0x374] ss:$8 sps:$4 sm:$0xff]  }
 0x124   :  { %691 = vmatpush1.bf16.msra.mxu0 %v1464_v11  ;;  %v1572_v11 = vld [vmem:[#allocation5 + $0x370] ss:$8 sps:$4 sm:$0xff]  }
 0x125   :  { %692 = vmatprep.subr.bf16.mxu0 %v1469_v12  ;;  %v1670_v12 = vmov 0  }
 0x128   :  { %693 = vmatpush1.bf16.msra.mxu0 %v1467_v13  ;;  %v1577_v13 = vld [vmem:[#allocation5 + $0x384] ss:$8 sps:$4 sm:$0xff]  }
 0x129   :  { %694 = vmatprep.subr.bf16.mxu0 %v1472_v14  ;;  %v963_v14 = vsub.s32 2, %v1721_v44 }
 0x12c   :  { %695 = vmatpush1.bf16.msra.mxu0 %v1470_v15  ;;  %v964_v15 = vrot.slane %v1726_v49, %v963_v14 }
 0x12d   :  { %696 = vmatprep.subr.bf16.mxu0 %v1475_v16 }
 0x130   :  { %697 = vmatpush1.bf16.msra.mxu0 %v1473_v17 }
 0x131   :  { %698 = vmatprep.subr.bf16.mxu0 %v1478_v18 }
 0x134   :  { %699 = vmatpush1.bf16.msra.mxu0 %v1476_v19 }
 0x135   :  { %700 = vmatprep.subr.bf16.mxu0 %v1481_v20 }
 0x138   :  { %701 = vmatpush1.bf16.msra.mxu0 %v1479_v21 }
 0x139   :  { %702 = vmatprep.subr.bf16.mxu0 %v1484_v22  ;;  %v1575_v22 = vld [vmem:[#allocation5 + $0x380] ss:$8 sps:$4 sm:$0xff]  }
 0x13c   :  { %703 = vmatpush1.bf16.msra.mxu0 %v1482_v23 }
 0x13d   :  { %704 = vmatprep.subr.bf16.mxu0 %v1487_v24  ;;  %v1580_v24 = vld [vmem:[#allocation5 + $0x394] ss:$8 sps:$4 sm:$0xff]  }
 0x140   :  { %705 = vmatpush1.bf16.msra.mxu0 %v1485_v25  ;;  %v1578_v25 = vld [vmem:[#allocation5 + $0x390] ss:$8 sps:$4 sm:$0xff]  }
 0x141   :  { %706 = vmatprep.subr.bf16.mxu0 %v1490_v26  ;;  %v1583_v26 = vld [vmem:[#allocation5 + $0x3a4] ss:$8 sps:$4 sm:$0xff]  }
 0x144   :  { %707 = vmatpush1.bf16.msra.mxu0 %v1488_v27  ;;  %v1581_v27 = vld [vmem:[#allocation5 + $0x3a0] ss:$8 sps:$4 sm:$0xff]  }
 0x145   :  { %708 = vmatprep.subr.bf16.mxu0 %v1493_v28  ;;  %v1586_v28 = vld [vmem:[#allocation5 + $0x3b4] ss:$8 sps:$4 sm:$0xff]  }
 0x148   :  { %709 = vmatpush1.bf16.msra.mxu0 %v1491_v29  ;;  %v1584_v29 = vld [vmem:[#allocation5 + $0x3b0] ss:$8 sps:$4 sm:$0xff]  }
 0x149   :  { %710 = vmatprep.subr.bf16.mxu0 %v1496_v30  ;;  %v1106_v30 = vsub.s32 3, %v1721_v44 }
 0x14b   :  { %v1107_v31 = vrot.slane %v1726_v49, %v1106_v30 }
 0x14c   :  { %711 = vmatpush1.bf16.msra.mxu0 %v1494_v32 }
 0x14d   :  { %712 = vmatprep.subr.bf16.mxu0 %v1499_v34 }
 0x150   :  { %713 = vmatpush1.bf16.msra.mxu0 %v1497_v35 }
 0x151   :  { %714 = vmatprep.subr.bf16.mxu0 %v1502_v37 }
 0x154   :  { %715 = vmatpush1.bf16.msra.mxu0 %v1500_v38 }
 0x157   :  { %717 = vmatmul.mubr.bf16.vlgmr.msra.gmra.mrb[4].mxu0 %v313_v40  ;;  %v1205_v40 = vrot.slane %v1726_v49, %v1204_v39 }
 0x22a   :  { %v718_v52 = vpop.f32.mrb[4].mxu0 }
 0x22b   :  { %v1392_v53 = vadd.f32 %v718_v52, %v318_v48  ;;  %v720_v54 = vpop.f32.mrb[5].mxu0 }
 0x22c   :  { %v1393_v55 = vadd.f32 %v720_v54, %v322_v51  ;;  %v722_v56 = vpop.f32.mrb[6].mxu0 }
 0x22d   :  { %v725_v57 = vmax.f32 %v1392_v53, 0.0  ;;  %v723_v58 = vpop.f32.mrb[7].mxu0 }
 0x22e   :  { %v726_v59 = vmax.f32 %v1393_v55, 0.0 }
 0x22f   :  { %v759_v62 = vpack.c.bf16 %v725_v57, %v725_v57 }
 0x230   :  { %v760_v60 = vpack.c.bf16 %v726_v59, %v726_v59 }
 0x232   :  { %953 = vmatprep.mubr.bf16.mxu1 %v760_v60 }
 0x233   :  { %954 = vmatmul.mubr.bf16.vlgmr.msra.gmra.mrb[4].mxu1 %v759_v62 }
 0x234   :  { %1065 = vmatpush1.bf16.msra.mxu1 %v1551_v61  ;;  %1096 = vmatprep.mubr.bf16.mxu1 %v1670_v12 }
 0x235   :  { %1066 = vmatprep.subr.bf16.mxu1 %v1556_v63 }
 0x238   :  { %1067 = vmatpush1.bf16.msra.mxu1 %v1554_v0 }
 0x239   :  { %1068 = vmatprep.subr.bf16.mxu1 %v1559_v1 }
 0x23c   :  { %1069 = vmatpush1.bf16.msra.mxu1 %v1557_v50 }
 0x23d   :  { %1070 = vmatprep.subr.bf16.mxu1 %v1562_v2 }
 0x240   :  { %1071 = vmatpush1.bf16.msra.mxu1 %v1560_v3 }
 0x241   :  { %1072 = vmatprep.subr.bf16.mxu1 %v1565_v4 }
 0x244   :  { %1073 = vmatpush1.bf16.msra.mxu1 %v1563_v5 }
 0x245   :  { %1074 = vmatprep.subr.bf16.mxu1 %v1568_v6 }
 0x248   :  { %1075 = vmatpush1.bf16.msra.mxu1 %v1566_v7 }
 0x249   :  { %1076 = vmatprep.subr.bf16.mxu1 %v1571_v8 }
 0x24c   :  { %1077 = vmatpush1.bf16.msra.mxu1 %v1569_v9 }
 0x24d   :  { %1078 = vmatprep.subr.bf16.mxu1 %v1574_v10 }
 0x250   :  { %1079 = vmatpush1.bf16.msra.mxu1 %v1572_v11 }
 0x251   :  { %1162 = vmatprep.subr.bf16.mxu1 %v1577_v13 }
 0x306   :  { %v955_v16 = vpop.f32.mrb[4].mxu1 }
 0x307   :  { %v965_v17 = vadd.f32 %v964_v15, %v955_v16  ;;  %v957_v18 = vpop.f32.mrb[5].mxu1 }
 0x308   :  { %v958_v19 = vpop.f32.mrb[6].mxu1 }
 0x309   :  { %v966_v20 = vmax.f32 %v965_v17, 0.0  ;;  %v959_v21 = vpop.f32.mrb[7].mxu1 }
 0x30b   :  { %v983_v23 = vpack.c.bf16 %v966_v20, %v966_v20 }
 0x30d   :  { %1097 = vmatmul.mubr.bf16.vlgmr.msra.gmra.mrb[8].mxu1 %v983_v23 }
 0x30e   :  { %1163 = vmatpush1.bf16.msra.mxu1 %v1575_v22  ;;  %1194 = vmatprep.mubr.bf16.mxu1 %v1670_v12 }
 0x30f   :  { %1164 = vmatprep.subr.bf16.mxu1 %v1580_v24 }
 0x312   :  { %1165 = vmatpush1.bf16.msra.mxu1 %v1578_v25 }
 0x313   :  { %1166 = vmatprep.subr.bf16.mxu1 %v1583_v26 }
 0x316   :  { %1167 = vmatpush1.bf16.msra.mxu1 %v1581_v27 }
 0x317   :  { %1168 = vmatprep.subr.bf16.mxu1 %v1586_v28 }
 0x31a   :  { %1169 = vmatpush1.bf16.msra.mxu1 %v1584_v29 }
 0x3e0   :  { %v1098_v32 = vpop.f32.mrb[8].mxu1 }
 0x3e1   :  { %v1108_v33 = vadd.f32 %v1107_v31, %v1098_v32  ;;  %v1100_v34 = vpop.f32.mrb[9].mxu1 }
 0x3e2   :  { %v1101_v35 = vpop.f32.mrb[10].mxu1 }
 0x3e3   :  { %v1109_v36 = vmax.f32 %v1108_v33, 0.0  ;;  %v1102_v37 = vpop.f32.mrb[11].mxu1 }
 0x3e5   :  { %v1118_v38 = vpack.c.bf16 %v1109_v36, %v1109_v36 }
 0x3e7   :  { %1359 = vmatmul.mubr.msk.bf16.vlgmr.msra.gmra.mrb[12].mxu1 %vm97_vm0, %v1118_v38 }
 0x4ba   :  { %v1196_v41 = vpop.f32.mrb[12].mxu1 }
 0x4bb   :  { %v1206_v42 = vadd.f32 %v1205_v40, %v1196_v41  ;;  %v1198_v43 = vpop.f32.mrb[13].mxu1 }
 0x4bc   :  { %v1199_v45 = vpop.f32.mrb[14].mxu1 }
 0x4bd   :  { %v1200_v46 = vpop.f32.mrb[15].mxu1  ;;  %v1208_v47 = vsel %vm1207_vm1, %v1206_v42, -inf }
 0x4be   :  { %1209 = vmax.xlane.f32.xlu0 %v1208_v47 }
 0x54b   :  { %v1210_v48 = vpop.xlane.xlu0 %1209 }
 0x54c   :  { %v1211_v51 = vsub.f32 %v1206_v42, %v1210_v48 }
 0x54e   :  { %v1212_v52 = vmul.f32 1.442695, %v1211_v51 }
 0x550   :  { %1587 = vpow2.f32 %v1212_v52 }
 0x55a   :  { %v1588_v53 = vpop.eup %1587 }
 0x55b   :  { %v1214_v54 = vsel %vm1207_vm1, %v1588_v53, 0.0 }
 0x55c   :  { %1215 = vadd.xlane.f32.xlu0 %v1214_v54 }
 0x5e9   :  { %v1216_v44 = vpop.xlane.xlu0 %1215 }
 0x5ea   :  { %1589 = vlog2.f32 %v1216_v44 }
 0x5f4   :  { %v1590_v49 = vpop.eup %1589 }
 0x5f5   :  { %v1218_v55 = vmul.f32 0.6931472, %v1590_v49 }
 0x5f7   :  { %v1219_v56 = vsub.f32 %v1211_v51, %v1218_v55 }
 0x5f9   :  { %1220 = vst.msk [vmem:[#allocation7] sm:$0x3] %vm1207_vm1, %v1219_v56 }
 0x5fa   :  { %1646 = shalt.err (!%p1643_p6)
}
 0x5fb   :  { %s1647_s17 = scalar_lea.hbm %s1767_s3, 32 }
 0x5fc   :  { %p1648_p7 = scmp.ne.s32.totalorder %s1767_s3, %s1647_s17  ;;  %p1651_p8 = scmp.lt.u32.totalorder %s1647_s17, %s1767_s3 }
 0x5fe   :  { %p1653_p9 = pnand %p1651_p8, %p1648_p7 }
 0x600   :  { %1656 = shalt.err (!%p1653_p9)
}
 0x601   :  { %1230 = dma.vmem_to_hbm [thread:$0]  %s1228_s13, 32, %s1767_s3, [#allocation4]  }
 0x602   :  { %1661 = dma.done.wait [#allocation4], 32  }
 0x603   :  { %1662 = vsyncadd [#allocation4], 4294967264 }
 0x604   :  { %1234 = vsyncpa [#allocation3], 1 }
 0x605   :  { %1235 = vsyncpa [#allocation6], 1 }
 0x606   :  { %1236 = vsyncpa [#allocation4], 1 }

</bundles_post_ra>
